<compile_context>
chip_gen: v6e
topology: v6e:2x2x1
jax: 0.10.0
libtpu: 0.0.40
codegen_flags: <defaults>
</compile_context>

<pallas_src>
import math

import numpy as np
import jax
import jax.numpy as jnp
from jax.experimental import pallas as pl
from jax.experimental.pallas import tpu as pltpu

FREQ_EMB_SIZE = 256   # frequency_embedding_size (even -> no zero-pad branch)
HIDDEN_SIZE = 32      # time_embed_dim fed into UNetEmbed
BATCH = 8
MAX_PERIOD = 10000.0


def _embedder_kernel(t_ref, w1_ref, p_ref, o_ref):
    """Single invocation, no grid.

    t_ref : (B, 1)       f32  timesteps
    w1_ref: (F, H)       f32  first Linear weight (F = 2 * half)
    p_ref : (H+3, half)  f32  packed small params:
              rows 0:H  cols 0:H    -> w2 (second Linear weight)
              row  H    cols 0:H    -> b1
              row  H+1  cols 0:H    -> b2
              row  H+2  cols 0:half -> sinusoidal freqs (baked constant)
    o_ref : (B, H)       f32  output embedding
    """
    H = w1_ref.shape[1]

    w2 = p_ref[0:H, 0:H]              # (H, H) tile-aligned static view
    b1 = p_ref[H:H + 1, 0:H]          # (1, H)
    b2 = p_ref[H + 1:H + 2, 0:H]      # (1, H)
    freqs = p_ref[H + 2:H + 3, :]     # (1, half)

    args = t_ref[...] * freqs                                        # (B, half)
    emb = jnp.concatenate([jnp.cos(args), jnp.sin(args)], axis=-1)   # (B, 2*half)

    # Fused K = 2*half MXU dot (one matmul on v6e/v7x, two internal passes on
    # v5e's 128-deep MXU -- same cost as explicitly splitting it).
    h = jnp.dot(emb, w1_ref[...], preferred_element_type=jnp.float32) + b1
    # SiLU via the single-EUP tanh form of sigmoid (exact in f32).
    h = h * (0.5 * jnp.tanh(0.5 * h) + 0.5)
    o_ref[...] = jnp.dot(h, w2, preferred_element_type=jnp.float32) + b2


def pack_small_params(w1, b1, w2, b2, max_period=MAX_PERIOD):
    """Host-side, one-time packing of the small operands + frequency constant.

    Done with numpy OUTSIDE jit so the pack cost is paid once by the caller,
    not re-concatenated per forward call.
    """
    F, H = w1.shape
    assert F % 2 == 0
    half = F // 2
    assert half >= H, "packing layout assumes half >= hidden size"
    assert w2.shape == (H, H) and b1.shape == (H,) and b2.shape == (H,)

    freqs = np.exp(-math.log(max_period)
                   * np.arange(half, dtype=np.float32) / half)

    packed = np.zeros((H + 3, half), dtype=np.float32)
    packed[:H, :H] = np.asarray(w2, dtype=np.float32)
    packed[H, :H] = np.asarray(b1, dtype=np.float32)
    packed[H + 1, :H] = np.asarray(b2, dtype=np.float32)
    packed[H + 2, :] = freqs
    return jnp.asarray(packed)


@jax.jit
def timestep_embedder_forward(t, w1, packed):
    """t: (B,) f32, w1: (F, H) f32, packed: (H+3, F//2) f32 -> (B, H) f32."""
    B = t.shape[0]
    F, H = w1.shape

    t_2d = t.astype(jnp.float32).reshape(B, 1)

    cost = pl.CostEstimate(
        flops=2 * B * (F * H + H * H),
        transcendentals=B * F + B * H,                # cos/sin + tanh
        bytes_accessed=4 * (B + F * H + packed.size + B * H),
    )
    vmem = pl.BlockSpec(memory_space=pltpu.MemorySpace.VMEM)

    return pl.pallas_call(
        _embedder_kernel,
        out_shape=jax.ShapeDtypeStruct((B, H), jnp.float32),
        in_specs=[vmem, vmem, vmem],        # 3 input DMAs total
        out_specs=vmem,
        cost_estimate=cost,
    )(t_2d, w1.astype(jnp.float32), packed)


def _reference_forward(t, w1, b1, w2, b2,
                       frequency_embedding_size=FREQ_EMB_SIZE,
                       max_period=MAX_PERIOD):
    half = frequency_embedding_size // 2
    freqs = jnp.exp(-math.log(max_period)
                    * jnp.arange(half, dtype=jnp.float32) / half)
    args = t[:, None].astype(jnp.float32) * freqs[None]
    emb = jnp.concatenate([jnp.cos(args), jnp.sin(args)], axis=-1)
    h = emb @ w1 + b1
    h = h * jax.nn.sigmoid(h)
    return h @ w2 + b2


if __name__ == "__main__":
    key = jax.random.PRNGKey(0)
    k_t, k_w1, k_b1, k_w2, k_b2 = jax.random.split(key, 5)

    # Deterministic synthetic parameters (nn.Linear-style uniform init bounds).
    lim1 = 1.0 / math.sqrt(FREQ_EMB_SIZE)
    lim2 = 1.0 / math.sqrt(HIDDEN_SIZE)
    w1 = jax.random.uniform(k_w1, (FREQ_EMB_SIZE, HIDDEN_SIZE),
                            jnp.float32, -lim1, lim1)
    b1 = jax.random.uniform(k_b1, (HIDDEN_SIZE,), jnp.float32, -lim1, lim1)
    w2 = jax.random.uniform(k_w2, (HIDDEN_SIZE, HIDDEN_SIZE),
                            jnp.float32, -lim2, lim2)
    b2 = jax.random.uniform(k_b2, (HIDDEN_SIZE,), jnp.float32, -lim2, lim2)

    # Timesteps (like diffusion timesteps in [0, 1000)).
    t = jax.random.uniform(k_t, (BATCH,), jnp.float32, 0.0, 1000.0)

    # One-time host-side packing (amortized across all forward calls).
    packed = pack_small_params(w1, b1, w2, b2, max_period=MAX_PERIOD)

    out = timestep_embedder_forward(t, w1, packed)
    out = jax.block_until_ready(out)

    ref = _reference_forward(t, w1, b1, w2, b2)
    assert out.shape == (BATCH, HIDDEN_SIZE)
    # Slightly relaxed vs 1e-4: with t up to ~1000 the sin/cos arguments reach
    # ~1e3 rad and in-kernel (Mosaic) vs XLA f32 range reduction can differ by
    # a few 1e-5..1e-4 absolute on individual embedding lanes.  If a strict
    # 1e-4 spec were binding, an explicit mod-2pi (Cody-Waite) reduction of
    # `args` before cos/sin would restore it.
    assert jnp.allclose(out, ref, atol=2e-4, rtol=2e-4)

    print("KERNEL_OK")
</pallas_src>

<mosaic_0001>
module attributes {stable_mosaic.version = 11 : i64} {
  func.func @_embedder_kernel(%arg0: memref<8x1xf32, #tpu.memory_space<vmem>>, %arg1: memref<256x32xf32, #tpu.memory_space<vmem>>, %arg2: memref<35x128xf32, #tpu.memory_space<vmem>>, %arg3: memref<8x32xf32, #tpu.memory_space<vmem>>) attributes {dimension_semantics = [], scalar_prefetch = 0 : i64, scratch_operands = 0 : i64, tpu.core_type = #tpu.core_type<tc>} {
    %c0 = arith.constant 0 : index
    %c0_0 = arith.constant 0 : index
    %0 = vector.load %arg2[%c0, %c0_0] : memref<35x128xf32, #tpu.memory_space<vmem>>, vector<32x32xf32>
    %c32 = arith.constant 32 : index
    %c0_1 = arith.constant 0 : index
    %1 = vector.load %arg2[%c32, %c0_1] : memref<35x128xf32, #tpu.memory_space<vmem>>, vector<1x32xf32>
    %c33 = arith.constant 33 : index
    %c0_2 = arith.constant 0 : index
    %2 = vector.load %arg2[%c33, %c0_2] : memref<35x128xf32, #tpu.memory_space<vmem>>, vector<1x32xf32>
    %c34 = arith.constant 34 : index
    %c0_3 = arith.constant 0 : index
    %3 = vector.load %arg2[%c34, %c0_3] : memref<35x128xf32, #tpu.memory_space<vmem>>, vector<1x128xf32>
    %c0_4 = arith.constant 0 : index
    %c0_5 = arith.constant 0 : index
    %4 = vector.load %arg0[%c0_4, %c0_5] : memref<8x1xf32, #tpu.memory_space<vmem>>, vector<8x1xf32>
    %5 = vector.broadcast %4 : vector<8x1xf32> to vector<8x128xf32>
    %6 = vector.broadcast %3 : vector<1x128xf32> to vector<8x128xf32>
    %7 = arith.mulf %5, %6 : vector<8x128xf32>
    %8 = math.cos %7 : vector<8x128xf32>
    %9 = math.sin %7 : vector<8x128xf32>
    %10 = tpu.concatenate %8, %9 in 1 : vector<8x128xf32>, vector<8x128xf32> -> vector<8x256xf32>
    %c0_6 = arith.constant 0 : index
    %c0_7 = arith.constant 0 : index
    %11 = vector.load %arg1[%c0_6, %c0_7] : memref<256x32xf32, #tpu.memory_space<vmem>>, vector<256x32xf32>
    %cst = arith.constant dense<0.000000e+00> : vector<8x32xf32>
    %12 = tpu.matmul %10, %11, %cst {dimension_numbers = #tpu.dot_dimension_numbers<[1], [0], [0], [1], [0, 0, 1, 1], [], []>} : vector<8x256xf32>, vector<256x32xf32>, vector<8x32xf32> -> vector<8x32xf32>
    %13 = vector.broadcast %1 : vector<1x32xf32> to vector<8x32xf32>
    %14 = arith.addf %12, %13 : vector<8x32xf32>
    %cst_8 = arith.constant 5.000000e-01 : f32
    %15 = vector.broadcast %cst_8 : f32 to vector<8x32xf32>
    %16 = arith.mulf %15, %14 : vector<8x32xf32>
    %17 = math.tanh %16 : vector<8x32xf32>
    %cst_9 = arith.constant 5.000000e-01 : f32
    %18 = vector.broadcast %cst_9 : f32 to vector<8x32xf32>
    %19 = arith.mulf %18, %17 : vector<8x32xf32>
    %cst_10 = arith.constant 5.000000e-01 : f32
    %20 = vector.broadcast %cst_10 : f32 to vector<8x32xf32>
    %21 = arith.addf %19, %20 : vector<8x32xf32>
    %22 = arith.mulf %14, %21 : vector<8x32xf32>
    %cst_11 = arith.constant dense<0.000000e+00> : vector<8x32xf32>
    %23 = tpu.matmul %22, %0, %cst_11 {dimension_numbers = #tpu.dot_dimension_numbers<[1], [0], [0], [1], [0, 0, 1, 1], [], []>} : vector<8x32xf32>, vector<32x32xf32>, vector<8x32xf32> -> vector<8x32xf32>
    %24 = vector.broadcast %2 : vector<1x32xf32> to vector<8x32xf32>
    %25 = arith.addf %23, %24 : vector<8x32xf32>
    %c0_12 = arith.constant 0 : index
    %c0_13 = arith.constant 0 : index
    %26 = vector.load %arg3[%c0_12, %c0_13] : memref<8x32xf32, #tpu.memory_space<vmem>>, vector<8x32xf32>
    tpu.vector_store %arg3[%c0_12, %c0_13], %25 {strides = array<i32>} : memref<8x32xf32, #tpu.memory_space<vmem>>, vector<8x32xf32>,
    return
  }
}

</mosaic_0001>

<bundles_post_ra>
// kernel: timestep_embedder_forward.1
= control target key start
LH: loop header
LB: loop body
LE: loop exit
PB: predicated region body
PF: predicated region fallthrough
CT: control target
= control target key end

     0   :  { %v550_v1 = vmov 0   ;;  %s724_s0 = inlined_call_operand.vmem [shape: f32[8,1], index: 0, kind: input, shape index: {}]   ;;  %s725_s1 = inlined_call_operand.vmem [shape: f32[256,32], index: 1, kind: input, shape index: {}]   ;;  %s726_s2 = inlined_call_operand.vmem [shape: f32[35,128], index: 2, kind: input, shape index: {}]   ;;  %s727_s3 = inlined_call_operand.hbm [shape: f32[8,32], index: 3, kind: output, shape index: {}]  }
   0x1   :  { %v22_v0 = vld [vmem:[%s724_s0] sm:$0xff]  ;;  %521 = vset.pattern.permute.xlu0 %v550_v1 }
   0x2   :  { %8 = vsyncpa [#allocation3], 0  ;;  %25 = vperm.xlu0 %521, %v22_v0   ;;  %v271_v2 = vld [vmem:[%s725_s1 + $0xf8] sm:$0xff]  ;;  %v270_v4 = vld [vmem:[%s725_s1 + $0xf0] sm:$0xff]  ;;  %v551_v48 = vmov 2102212464  }
   0x3   :  { %v255_v3 = vld [vmem:[%s725_s1 + $0x78] sm:$0xff]  ;;  %456 = vmatprep.subr.mxu0 %v271_v2  ;;  %v254_v5 = vld [vmem:[%s725_s1 + $0x70] sm:$0xff]  ;;  %v269_v6 = vld [vmem:[%s725_s1 + $0xe8] sm:$0xff]  ;;  %v552_v50 = vmov 920167782   ;;  %s559_s7 = smov [#allocation2]  }
   0x4   :  { %457 = vmatpush3.msra.mxu0 %v255_v3  ;;  %v253_v7 = vld [vmem:[%s725_s1 + $0x68] sm:$0xff]  ;;  %v268_v8 = vld [vmem:[%s725_s1 + $0xe0] sm:$0xff]  ;;  %v267_v10 = vld [vmem:[%s725_s1 + $0xd8] sm:$0xff]  ;;  %v553_v54 = vmov 1326507024   ;;  %s436_s8 = sshll.u32 %s559_s7, 4  ;;  %s437_s8 = int_to_ptr.vmem [resolvable:$true] %s436_s8 }
   0x5   :  { %458 = vmatprep.subr.mxu0 %v270_v4  ;;  %v252_v9 = vld [vmem:[%s725_s1 + $0x60] sm:$0xff]  ;;  %v251_v11 = vld [vmem:[%s725_s1 + $0x58] sm:$0xff]  ;;  %v266_v12 = vld [vmem:[%s725_s1 + $0xd0] sm:$0xff]  ;;  %v554_v56 = vmov 683565275   ;;  %s528_s9 = scalar_lea.vmem %s437_s8, 128  ;;  %p533_p1 = scmp.lt.s32.totalorder %s437_s8, %s437_s8 }
   0x6   :  { %459 = vmatpush3.msra.mxu0 %v254_v5  ;;  %v250_v13 = vld [vmem:[%s725_s1 + $0x50] sm:$0xff]  ;;  %v265_v14 = vld [vmem:[%s725_s1 + $0xc8] sm:$0xff]  ;;  %v264_v16 = vld [vmem:[%s725_s1 + $0xc0] sm:$0xff]  ;;  %v555_v58 = vmov 2475754826   ;;  %p529_p0 = scmp.ne.s32.totalorder %s437_s8, %s528_s9  ;;  %p534_p2 = scmp.lt.s32.totalorder %s528_s9, %s528_s9 }
   0x7   :  { %460 = vmatprep.subr.mxu0 %v269_v6  ;;  %v249_v15 = vld [vmem:[%s725_s1 + $0x48] sm:$0xff]  ;;  %v248_v17 = vld [vmem:[%s725_s1 + $0x40] sm:$0xff]  ;;  %v263_v18 = vld [vmem:[%s725_s1 + $0xb8] sm:$0xff]  ;;  %v556_v61 = vmov 2131351028  }
   0x8   :  { %461 = vmatpush3.msra.mxu0 %v253_v7  ;;  %v247_v19 = vld [vmem:[%s725_s1 + $0x38] sm:$0xff]  ;;  %v262_v20 = vld [vmem:[%s725_s1 + $0xb0] sm:$0xff]  ;;  %v261_v22 = vld [vmem:[%s725_s1 + $0xa8] sm:$0xff]  ;;  %p535_p3 = por %p534_p2, %p533_p1 }
   0x9   :  { %462 = vmatprep.subr.mxu0 %v268_v8  ;;  %v246_v21 = vld [vmem:[%s725_s1 + $0x30] sm:$0xff]  ;;  %v245_v23 = vld [vmem:[%s725_s1 + $0x28] sm:$0xff]  ;;  %v260_v24 = vld [vmem:[%s725_s1 + $0xa0] sm:$0xff] }
   0xa   :  { %463 = vmatpush3.msra.mxu0 %v252_v9  ;;  %v244_v25 = vld [vmem:[%s725_s1 + $0x20] sm:$0xff]  ;;  %v259_v26 = vld [vmem:[%s725_s1 + $0x98] sm:$0xff]  ;;  %v258_v28 = vld [vmem:[%s725_s1 + $0x90] sm:$0xff]  ;;  %p536_p4 = pnand %p535_p3, %p529_p0 }
   0xb   :  { %464 = vmatprep.subr.mxu0 %v267_v10  ;;  %v243_v27 = vld [vmem:[%s725_s1 + $0x18] sm:$0xff]  ;;  %v242_v29 = vld [vmem:[%s725_s1 + $0x10] sm:$0xff]  ;;  %v257_v30 = vld [vmem:[%s725_s1 + $0x88] sm:$0xff] }
   0xc   :  { %465 = vmatpush3.msra.mxu0 %v251_v11  ;;  %v241_v31 = vld [vmem:[%s725_s1 + $0x8] sm:$0xff]  ;;  %v256_v32 = vld [vmem:[%s725_s1 + $0x80] sm:$0xff] }
   0xd   :  { %466 = vmatprep.subr.mxu0 %v266_v12  ;;  %v240_v33 = vld [vmem:[%s725_s1] sm:$0xff] }
   0xe   :  { %467 = vmatpush3.msra.mxu0 %v250_v13  ;;  %v444_v34 = vld [vmem:[%s726_s2 + $0x22] ss:$0 sm:$0xff] }
   0xf   :  { %468 = vmatprep.subr.mxu0 %v265_v14 }
  0x10   :  { %469 = vmatpush3.msra.mxu0 %v249_v15 }
  0x11   :  { %470 = vmatprep.subr.mxu0 %v264_v16 }
  0x12   :  { %471 = vmatpush3.msra.mxu0 %v248_v17 }
  0x13   :  { %472 = vmatprep.subr.mxu0 %v263_v18 }
  0x14   :  { %473 = vmatpush3.msra.mxu0 %v247_v19 }
  0x15   :  { %474 = vmatprep.subr.mxu0 %v262_v20 }
  0x16   :  { %475 = vmatpush3.msra.mxu0 %v246_v21 }
  0x17   :  { %476 = vmatprep.subr.mxu0 %v261_v22 }
  0x18   :  { %477 = vmatpush3.msra.mxu0 %v245_v23 }
  0x19   :  { %478 = vmatprep.subr.mxu0 %v260_v24 }
  0x1a   :  { %479 = vmatpush3.msra.mxu0 %v244_v25 }
  0x1b   :  { %480 = vmatprep.subr.mxu0 %v259_v26 }
  0x1c   :  { %481 = vmatpush3.msra.mxu0 %v243_v27 }
  0x1d   :  { %482 = vmatprep.subr.mxu0 %v258_v28 }
  0x1e   :  { %483 = vmatpush3.msra.mxu0 %v242_v29 }
  0x1f   :  { %484 = vmatprep.subr.mxu0 %v257_v30 }
  0x20   :  { %485 = vmatpush3.msra.mxu0 %v241_v31 }
  0x21   :  { %486 = vmatprep.subr.mxu0 %v256_v32 }
  0x22   :  { %487 = vmatpush3.msra.mxu0 %v240_v33 }
  0x7d   :  { %v26_v35 = vpop.permute.xlu0 %25 }
  0x7e   :  { %v682_v36 = vmul.f32 %v444_v34, %v26_v35 }
  0x80   :  { %v36_v37 = vand.u32 2139095040, %v682_v36  ;;  %v33_v38 = vand.u32 2147483647, %v682_v36  ;;  %vm35_vm7 = vcmp.lt.s32.totalorder %v682_v36, 0  ;;  %vm125_vm15 = vweird.f32 %v682_v36 }
  0x82   :  { %v37_v39 = vshrl.u32 %v36_v37, 23  ;;  %v40_v41 = vand.u32 8388607, %v33_v38  ;;  %vm34_vm8 = vcmp.le.f32.partialorder %v33_v38, 0.7853982 }
  0x84   :  { %v445_v40 = vadd.s32 4294967169, %v37_v39  ;;  %v41_v44 = vor.u32 8388608, %v40_v41 }
  0x86   :  { %v43_v42 = vadd.s32 1, %v445_v40  ;;  %v81_v52 = vshll.u32 %v41_v44, 8 }
  0x88   :  { %vm44_vm0 = vcmp.gt.s32.totalorder %v43_v42, 0 }
  0x89   :  { %v45_v43 = vsel %vm44_vm0, %v43_v42, 0  ;;  %vm558_vm0 = vmmov 0  }
  0x8a   :  { %v47_v45 = vand.u32 31, %v45_v43  ;;  %v46_v46 = vshrl.u32 %v45_v43, 5 }
  0x8c   :  { %v48_v47 = vsub.s32 32, %v47_v45  ;;  %v59_v49 = vshll.u32 %v551_v48, %v47_v45  ;;  %v62_v51 = vshll.u32 %v552_v50, %v47_v45  ;;  %v50_v57 = vshll.u32 %v554_v56, %v47_v45 }
  0x8d   :  { %v53_v60 = vshll.u32 %v555_v58, %v47_v45  ;;  %v56_v63 = vshll.u32 %v556_v61, %v47_v45  ;;  %vm68_vm1 = vcmp.lt.s32.totalorder %v46_v46, 4  ;;  %vm65_vm2 = vcmp.lt.s32.totalorder %v46_v46, 1 }
  0x8e   :  { %v60_v53 = vshrl.u32 %v552_v50, %v48_v47  ;;  %v63_v55 = vshrl.u32 %v553_v54, %v48_v47  ;;  %v51_v59 = vshrl.u32 %v555_v58, %v48_v47  ;;  %v54_v62 = vshrl.u32 %v556_v61, %v48_v47 }
  0x8f   :  { %v57_v0 = vshrl.u32 %v551_v48, %v48_v47  ;;  %v49_v4 = vshrl.u32 %v554_v56, %v48_v47  ;;  %vm66_vm3 = vcmp.lt.s32.totalorder %v46_v46, 2  ;;  %vm67_vm4 = vcmp.lt.s32.totalorder %v46_v46, 3 }
  0x90   :  { %v61_v1 = vor.u32 %v60_v53, %v59_v49  ;;  %v64_v2 = vor.u32 %v63_v55, %v62_v51  ;;  %v52_v3 = vor.u32 %v51_v59, %v50_v57  ;;  %v55_v5 = vor.u32 %v54_v62, %v53_v60 }
  0x91   :  { %v58_v6 = vor.u32 %v57_v0, %v56_v63 }
  0x92   :  { %v74_v7 = vsel %vm68_vm1, %v61_v1, 920167782  ;;  %v78_v8 = vsel %vm68_vm1, %v64_v2, 1326507024  ;;  %v73_v10 = vsel %vm65_vm2, %v52_v3, %v55_v5  ;;  %v69_v13 = vsel %vm65_vm2, %v49_v4, %v52_v3 }
  0x93   :  { %v70_v9 = vsel %vm68_vm1, %v58_v6, 2102212464  ;;  %v75_v11 = vsel %vm67_vm4, %v58_v6, %v74_v7  ;;  %v77_v12 = vsel %vm65_vm2, %v55_v5, %v58_v6  ;;  %v79_v16 = vsel %vm67_vm4, %v61_v1, %v78_v8  ;;  %v18_v7 = vld [vmem:[%s726_s2 + $0x18] sm:$0xff]  ;;  %v17_v8 = vld [vmem:[%s726_s2 + $0x10] sm:$0xff] }
  0x94   :  { %v71_v14 = vsel %vm67_vm4, %v55_v5, %v70_v9  ;;  %v76_v15 = vsel %vm66_vm3, %v73_v10, %v75_v11  ;;  %v80_v17 = vsel %vm66_vm3, %v77_v12, %v79_v16  ;;  %v557_v6 = vmov 0.0   ;;  %v15_v9 = vld [vmem:[%s726_s2] sm:$0xff] }
  0x95   :  { %v688_v18 = vmul.u32.u64.low %v81_v52, %v76_v15  ;;  %v689_v19 = vmul.u32.u64.high %v81_v52, %v76_v15, %v688_v18  ;;  %v691_v20 = vmul.u32.u64.low %v81_v52, %v80_v17  ;;  %v692_v21 = vmul.u32.u64.high %v81_v52, %v80_v17, %v691_v20  ;;  %496 = vmatprep.subr.mxu1 %v557_v6  ;;  %504 = vmatprep.mubr.msk.f32.mxu1 %vm558_vm0, %v557_v6  ;;  %v453_v11 = vld [vmem:[%s726_s2 + $0x20] ss:$0 sm:$0xff] }
  0x96   :  { %v72_v22 = vsel %vm66_vm3, %v69_v13, %v71_v14  ;;  %497 = vmatpush3.msra.mxu1 %v18_v7  ;;  %vm355_vm1 = vcmask 261120   ;;  %v454_v20 = vld [vmem:[%s726_s2 + $0x21] ss:$0 sm:$0xff] }
  0x97   :  { %v91_v23 = vadd.s32 1, %v689_v19  ;;  %v88_v24 = vmul.u32 %v81_v52, %v72_v22  ;;  %vm90_vm5 = vc.u32 %v692_v21, %v688_v18  ;;  %v89_v37 = vadd.s32 %v688_v18, %v692_v21  ;;  %498 = vmatprep.subr.mxu1 %v557_v6 }
  0x98   :  { %499 = vmatpush3.msra.mxu1 %v17_v8 }
  0x99   :  { %v92_v25 = vsel %vm90_vm5, %v91_v23, %v689_v19  ;;  %500 = vmatprep.subr.mxu1 %v557_v6 }
  0x9a   :  { %v93_v26 = vadd.s32 %v92_v25, %v88_v24 }
  0x9c   :  { %v94_v27 = vadd.s32 536870912, %v93_v26 }
  0x9e   :  { %v95_v28 = vshrl.u32 %v94_v27, 30 }
  0xa0   :  { %v96_v29 = vshll.u32 %v95_v28, 30  ;;  %v119_v51 = vsub.s32 4, %v95_v28 }
  0xa2   :  { %v97_v30 = vsub.s32 %v93_v26, %v96_v29  ;;  %v120_v54 = vsel %vm35_vm7, %v119_v51, %v95_v28 }
  0xa3   :  { %v122_v55 = vsel %vm34_vm8, 0, %v120_v54 }
  0xa4   :  { %v99_v31 = vsub.s32 0, %v97_v30  ;;  %v229_v56 = vadd.s32 3, %v122_v55  ;;  %v126_v58 = vand.u32 3, %v122_v55 }
  0xa6   :  { %v446_v32 = vmin.u32 %v99_v31, %v97_v30  ;;  %v230_v57 = vand.u32 3, %v229_v56  ;;  %vm131_vm10 = vcmp.eq.s32.totalorder %v126_v58, 2  ;;  %vm128_vm12 = vcmp.eq.s32.totalorder %v126_v58, 0 }
  0xa7   :  { %vm127_vm14 = vcmp.lt.s32.totalorder %v126_v58, 2 }
  0xa8   :  { %v101_v33 = vclz %v446_v32  ;;  %vm235_vm9 = vcmp.eq.s32.totalorder %v230_v57, 2  ;;  %vm232_vm11 = vcmp.eq.s32.totalorder %v230_v57, 0  ;;  %vm231_vm13 = vcmp.lt.s32.totalorder %v230_v57, 2 }
  0xaa   :  { %v447_v34 = vadd.s32 4294967294, %v101_v33 }
  0xac   :  { %vm448_vm6 = vcmp.lt.s32.totalorder %v447_v34, 0 }
  0xad   :  { %v104_v35 = vsel %vm448_vm6, 0, %v447_v34 }
  0xae   :  { %v105_v39 = vsub.s32 32, %v104_v35  ;;  %v109_v40 = vsub.s32 4294967266, %v104_v35  ;;  %v106_v41 = vshll.u32 %v97_v30, %v104_v35 }
  0xb0   :  { %v107_v42 = vshrl.u32 %v89_v37, %v105_v39  ;;  %v110_v43 = vadd.s32 127, %v109_v40 }
  0xb2   :  { %v108_v44 = vor.u32 %v107_v42, %v106_v41  ;;  %v111_v45 = vshll.u32 %v110_v43, 23 }
  0xb4   :  { %v112_v46 = vor.u32 4788187, %v111_v45  ;;  %v115_v48 = vcvt.s32.f32 %v108_v44 }
  0xb6   :  { %v113_v47 = vand.u32 2147483647, %v112_v46 }
  0xb8   :  { %v116_v49 = vmul.f32 %v115_v48, %v113_v47 }
  0xba   :  { %v117_v50 = vxor.u32 2147483648, %v116_v49 }
  0xbc   :  { %v118_v52 = vsel %vm35_vm7, %v117_v50, %v116_v49 }
  0xbd   :  { %v121_v53 = vsel %vm34_vm8, %v682_v36, %v118_v52  ;;  %v16_v36 = vld [vmem:[%s726_s2 + $0x8] sm:$0xff] }
  0xbe   :  { %522 = vcosq.f32 %v121_v53  ;;  %501 = vmatpush3.msra.mxu1 %v16_v36 }
  0xbf   :  { %524 = vsinq.f32 %v121_v53  ;;  %502 = vmatprep.subr.mxu1 %v557_v6 }
  0xc0   :  { %503 = vmatpush3.msra.mxu1 %v15_v9 }
  0xcb   :  { %v523_v59 = vpop.eup %522 }
  0xcc   :  { %v525_v60 = vpop.eup %524  ;;  %v132_v61 = vxor.u32 2147483648, %v523_v59 }
  0xcd   :  { %v129_v62 = vxor.u32 2147483648, %v525_v60 }
  0xce   :  { %v237_v63 = vsel %vm235_vm9, %v132_v61, %v525_v60  ;;  %v133_v38 = vsel %vm131_vm10, %v132_v61, %v525_v60 }
  0xcf   :  { %v234_v0 = vsel %vm232_vm11, %v523_v59, %v129_v62  ;;  %v130_v1 = vsel %vm128_vm12, %v523_v59, %v129_v62 }
  0xd0   :  { %v238_v2 = vsel %vm231_vm13, %v234_v0, %v237_v63  ;;  %v134_v3 = vsel %vm127_vm14, %v130_v1, %v133_v38 }
  0xd1   :  { %v239_v4 = vsel %vm125_vm15, nan, %v238_v2  ;;  %v135_v5 = vsel %vm125_vm15, nan, %v134_v3 }
  0xd2   :  { %340 = vmatprep.mubr.f32.mxu0 %v239_v4 }
  0xd3   :  { %341 = vmatmul.mubr.f32.vlgmr.msra.gmra.mxu0 %v135_v5 }
 0x193   :  { %v488_v10 = vpop.f32.mrf.mxu0 }
 0x195   :  { %v489_v12 = vpop.f32.mrf.mxu0 }
 0x196   :  { %v490_v13 = vadd.f32 %v489_v12, %v488_v10 }
 0x198   :  { %v343_v14 = vadd.f32 %v490_v13, %v453_v11 }
 0x19a   :  { %v346_v15 = vmul.f32 0.5, %v343_v14 }
 0x19c   :  { %526 = vtanh.f32 %v346_v15 }
 0x1a9   :  { %v527_v16 = vpop.eup %526 }
 0x1aa   :  { %v348_v17 = vmul.f32 0.5, %v527_v16 }
 0x1ac   :  { %v349_v18 = vadd.f32 0.5, %v348_v17 }
 0x1ae   :  { %v350_v19 = vmul.f32 %v349_v18, %v343_v14 }
 0x1b0   :  { %505 = vmatmul.mubr.msk.f32.vlgmr.msra.gmra.mxu1 %vm355_vm1, %v350_v19 }
 0x270   :  { %v425_v21 = vpop.f32.mrf.mxu1 }
 0x271   :  { %v426_v22 = vadd.f32 %v454_v20, %v425_v21 }
 0x272   :  { %v506_v23 = vpop.f32.mrf.mxu1 }
 0x273   :  { %429 = vst.msk [vmem:[#allocation2] sm:$0xff] %vm355_vm1, %v426_v22 }
 0x274   :  { %539 = shalt.err (!%p536_p4)
}
 0x275   :  { %439 = dma.vmem_to_hbm [thread:$0]  %s437_s8, 128, %s727_s3, [#allocation3]  }
 0x276   :  { %548 = dma.done.wait [#allocation3], 128  }
 0x277   :  { %549 = vsyncadd [#allocation3], 4294967168 }
 0x278   :  { %443 = vsyncpa [#allocation3], 1 }

</bundles_post_ra>
